<compile_context>
chip_gen: v7x
topology: tpu7x:2x2x1
jax: 0.10.0
libtpu: 0.0.40
codegen_flags: <defaults>
</compile_context>

<pallas_src>
import jax
import jax.numpy as jnp
from jax.experimental import pallas as pl
from jax.experimental.pallas import tpu as pltpu


_TB_MAX = 4096           # batch-tile cap (lanes); sweep 2048-8192 per generation
_MIN_PALLAS_BATCH = 512  # below this, fused plain-JAX beats a custom call


def _round_up(x, m):
    return (x + m - 1) // m * m


def _choose_tile(b_pad):
    tb = min(_TB_MAX, b_pad)
    # Prefer >=2 grid steps when the batch allows it, so
    # dimension_semantics=("parallel",) can shard across v7x's 2 TensorCores.
    if tb == b_pad and b_pad >= 256 and (b_pad // 2) % 128 == 0:
        tb = b_pad // 2
    return tb


def guided_attention_kernel(scal_ref, zones_ref, risks_ref, wb_ref,
                            ctx_ref, attn_ref):
    # scal_ref  : SMEM (2,)     [a = <w1,w2>,  c = <b1,w2> + b2]
    # zones_ref : VMEM (Z, TB)  (batch on the 128-lane axis)
    # risks_ref : VMEM (Z, TB)
    # wb_ref    : VMEM (E, 2)   column 0 = w1, column 1 = b1 (grid-resident)
    # ctx_ref   : VMEM (E, TB)
    # attn_ref  : VMEM (Z, TB)
    a = scal_ref[0]
    c = scal_ref[1]

    zones = zones_ref[...]                                   # (Z, TB)
    logits = zones * a + risks_ref[...] * 5.0 + c            # (Z, TB)

    # Numerically-stable softmax over Z (sublane axis); exact division so
    # rows sum to 1 up to rounding (the b1 term of ctx relies on that).
    m = jnp.max(logits, axis=0, keepdims=True)               # (1, TB)
    e = jnp.exp(logits - m)                                   # (Z, TB)
    denom = jnp.sum(e, axis=0, keepdims=True)                 # (1, TB)
    attn = e / denom                                          # (Z, TB)
    attn_ref[...] = attn

    # context[e, b] = (sum_z attn[z,b] * zones[z,b]) * w1[e] + b1[e]
    s = jnp.sum(attn * zones, axis=0, keepdims=True)          # (1, TB)
    w1 = wb_ref[:, 0:1]                                       # (E, 1)
    b1 = wb_ref[:, 1:2]                                       # (E, 1)
    ctx_ref[...] = w1 * s + b1                                # (E, TB)


def guided_attention_fm(zones_t, risks_t, w1, b1, w2, b2, *, tb=None):
    """Feature-major entry point: zones_t/risks_t are (Z, B); returns
    context (E, B) and attn (Z, B).  No wrapper-side transposes -- use this
    when the caller can produce / consume feature-major arrays (saves 2-3x of
    this op's end-to-end HBM traffic)."""
    f32 = jnp.float32
    zones_t = zones_t.astype(f32)
    risks_t = risks_t.astype(f32)
    w1 = w1.astype(f32)
    b1 = b1.astype(f32)
    w2 = w2.astype(f32)
    b2 = b2.astype(f32)

    Z, B = zones_t.shape
    E = w1.shape[0]

    # Linear(1,E) followed by Linear(E,1) is affine in the scalar zone value.
    a = jnp.dot(w1, w2)
    c = jnp.dot(b1, w2) + b2[0]
    scal = jnp.stack([a, c])                     # (2,)  -> SMEM
    wb = jnp.stack([w1, b1], axis=1)             # (E,2) -> resident VMEM params

    # Pad the batch to a 128-lane multiple: keeps stores lane-dense and keeps
    # pipelining / megacore sharding alive for ragged batch sizes.
    b_pad = _round_up(max(B, 128), 128)
    if tb is None:
        tb = _choose_tile(b_pad)
    else:
        b_pad = _round_up(b_pad, tb)
    assert tb % 128 == 0 and b_pad % tb == 0

    if b_pad != B:
        pad = b_pad - B
        zones_t = jnp.pad(zones_t, ((0, 0), (0, pad)))
        risks_t = jnp.pad(risks_t, ((0, 0), (0, pad)))

    grid = (b_pad // tb,)
    ctx_t, attn_t = pl.pallas_call(
        guided_attention_kernel,
        out_shape=(jax.ShapeDtypeStruct((E, b_pad), f32),
                   jax.ShapeDtypeStruct((Z, b_pad), f32)),
        grid=grid,
        in_specs=[
            pl.BlockSpec(memory_space=pltpu.MemorySpace.SMEM),   # scal
            pl.BlockSpec((Z, tb), lambda i: (0, i)),             # zones_t
            pl.BlockSpec((Z, tb), lambda i: (0, i)),             # risks_t
            pl.BlockSpec((E, 2), lambda i: (0, 0)),              # wb (resident)
        ],
        out_specs=(
            pl.BlockSpec((E, tb), lambda i: (0, i)),             # ctx_t
            pl.BlockSpec((Z, tb), lambda i: (0, i)),             # attn_t
        ),
        compiler_params=pltpu.CompilerParams(
            dimension_semantics=("parallel",)),
    )(scal, zones_t, risks_t, wb)

    if b_pad != B:
        ctx_t = ctx_t[:, :B]
        attn_t = attn_t[:, :B]
    return ctx_t, attn_t


def guided_attention(zones, risks, w1, b1, w2, b2, *, tb=None,
                     force_pallas=False):
    """Batch-major entry point matching the PyTorch module:
    zones, risks: (B, Z)  ->  context (B, E), attn (B, Z)."""
    f32 = jnp.float32
    zones = zones.astype(f32)
    risks = risks.astype(f32)
    w1 = w1.astype(f32)
    b1 = b1.astype(f32)
    w2 = w2.astype(f32)
    b2 = b2.astype(f32)
    B, Z = zones.shape

    if B < _MIN_PALLAS_BATCH and not force_pallas:
        # Tiny-batch bypass (production B=2): the custom-call launch and the
        # layout passes dominate otherwise; XLA fuses this into ~one kernel.
        a = jnp.dot(w1, w2)
        c = jnp.dot(b1, w2) + b2[0]
        logits = zones * a + risks * 5.0 + c
        attn = jax.nn.softmax(logits, axis=-1)
        s = jnp.sum(attn * zones, axis=-1, keepdims=True)        # (B, 1)
        ctx = s * w1[None, :] + b1[None, :]                       # (B, E)
        return ctx, attn

    # TODO(synk): callers that can hold zones/risks feature-major should call
    # guided_attention_fm directly; these transposes are extra HBM passes.
    ctx_t, attn_t = guided_attention_fm(zones.T, risks.T, w1, b1, w2, b2, tb=tb)
    return ctx_t.T, attn_t.T


def guided_attention_ref(zones, risks, w1, b1, w2, b2):
    # Pure-JAX reference mirroring the PyTorch forward (no collapse).
    zf = zones[:, :, None] * w1[None, None, :] + b1[None, None, :]     # (B,Z,E)
    logits = jnp.sum(zf * w2[None, None, :], axis=-1) + b2[0] + risks * 5.0
    attn = jax.nn.softmax(logits, axis=-1)
    ctx = jnp.sum(attn[:, :, None] * zf, axis=1)
    return ctx, attn


if __name__ == "__main__":
    Z, E = 8, 32   # num_zones = 8, embed_dim = 32

    key = jax.random.PRNGKey(0)
    k_w1, k_b1, k_q, k_w2, k_b2, k_data = jax.random.split(key, 6)

    # Deterministic synthetic parameters (shapes from __init__):
    w1 = jax.random.normal(k_w1, (E,), jnp.float32) * 0.5    # zone_embed.weight (E,1)
    b1 = jax.random.normal(k_b1, (E,), jnp.float32) * 0.1    # zone_embed.bias   (E,)
    query = jax.random.normal(k_q, (E,), jnp.float32)         # self.query (unused in forward)
    w2 = jax.random.normal(k_w2, (E,), jnp.float32) * 0.5    # attn_fc.weight (1,E)
    b2 = jax.random.normal(k_b2, (1,), jnp.float32) * 0.1    # attn_fc.bias   (1,)

    def check(B, **kw):
        kz, kr = jax.random.split(jax.random.fold_in(k_data, B))
        zones = jax.random.normal(kz, (B, Z), jnp.float32)
        risks = jax.random.uniform(kr, (B, Z), jnp.float32)
        ctx, attn = guided_attention(zones, risks, w1, b1, w2, b2, **kw)
        jax.block_until_ready((ctx, attn))
        ctx_r, attn_r = guided_attention_ref(zones, risks, w1, b1, w2, b2)
        assert ctx.shape == (B, E) and attn.shape == (B, Z)
        assert jnp.allclose(attn, attn_r, atol=1e-5, rtol=1e-4), \
            float(jnp.abs(attn - attn_r).max())
        assert jnp.allclose(ctx, ctx_r, atol=1e-5, rtol=1e-4), \
            float(jnp.abs(ctx - ctx_r).max())

    # 1) Tiny production shape (B=2): fused-JAX bypass path.
    check(2)
    # 2) Same tiny shape forced through the Pallas kernel (pads B=2 -> 128).
    check(2, force_pallas=True)
    # 3) Ragged batch, multi-step grid: 300 -> padded 384, tb=128, 3 steps.
    check(300, force_pallas=True, tb=128)
    # 4) Default tiling at B=512: tb=256, 2 grid steps (megacore-splittable).
    check(512)

    print("KERNEL_OK")
</pallas_src>

<mosaic_0001>
module attributes {stable_mosaic.version = 11 : i64} {
  func.func @guided_attention_kernel(%arg0: i32, %arg1: memref<2xf32, #tpu.memory_space<smem>>, %arg2: memref<8x128xf32, #tpu.memory_space<vmem>>, %arg3: memref<8x128xf32, #tpu.memory_space<vmem>>, %arg4: memref<32x2xf32, #tpu.memory_space<vmem>>, %arg5: memref<32x128xf32, #tpu.memory_space<vmem>>, %arg6: memref<8x128xf32, #tpu.memory_space<vmem>>) attributes {dimension_semantics = [#tpu.dimension_semantics<parallel>], iteration_bounds = array<i64: 1>, scalar_prefetch = 0 : i64, scratch_operands = 0 : i64, tpu.core_type = #tpu.core_type<tc>, window_params = [{transform_indices = @transform_0, window_bounds = array<i64: 2>}, {transform_indices = @transform_1, window_bounds = array<i64: 8, 128>}, {transform_indices = @transform_2, window_bounds = array<i64: 8, 128>}, {pipeline_mode = #tpu.pipeline_mode<synchronous>, transform_indices = @transform_3, window_bounds = array<i64: 32, 2>}, {transform_indices = @transform_4, window_bounds = array<i64: 32, 128>}, {transform_indices = @transform_5, window_bounds = array<i64: 8, 128>}]} {
    %c0 = arith.constant 0 : index
    %0 = memref.load %arg1[%c0] : memref<2xf32, #tpu.memory_space<smem>>
    %c1 = arith.constant 1 : index
    %1 = memref.load %arg1[%c1] : memref<2xf32, #tpu.memory_space<smem>>
    %c0_0 = arith.constant 0 : index
    %c0_1 = arith.constant 0 : index
    %2 = vector.load %arg2[%c0_0, %c0_1] : memref<8x128xf32, #tpu.memory_space<vmem>>, vector<8x128xf32>
    %3 = vector.broadcast %0 : f32 to vector<8x128xf32>
    %4 = arith.mulf %2, %3 : vector<8x128xf32>
    %c0_2 = arith.constant 0 : index
    %c0_3 = arith.constant 0 : index
    %5 = vector.load %arg3[%c0_2, %c0_3] : memref<8x128xf32, #tpu.memory_space<vmem>>, vector<8x128xf32>
    %cst = arith.constant 5.000000e+00 : f32
    %6 = vector.broadcast %cst : f32 to vector<8x128xf32>
    %7 = arith.mulf %5, %6 : vector<8x128xf32>
    %8 = arith.addf %4, %7 : vector<8x128xf32>
    %9 = vector.broadcast %1 : f32 to vector<8x128xf32>
    %10 = arith.addf %8, %9 : vector<8x128xf32>
    %cst_4 = arith.constant dense<0xFF800000> : vector<128xf32>
    %11 = vector.multi_reduction <maximumf>, %10, %cst_4 [0] : vector<8x128xf32> to vector<128xf32>
    %12 = vector.shape_cast %11 : vector<128xf32> to vector<1x128xf32>
    %13 = vector.broadcast %12 : vector<1x128xf32> to vector<8x128xf32>
    %14 = arith.subf %10, %13 : vector<8x128xf32>
    %15 = math.exp %14 : vector<8x128xf32>
    %cst_5 = arith.constant dense<0.000000e+00> : vector<128xf32>
    %16 = vector.multi_reduction <add>, %15, %cst_5 [0] : vector<8x128xf32> to vector<128xf32>
    %17 = vector.shape_cast %16 : vector<128xf32> to vector<1x128xf32>
    %18 = vector.broadcast %17 : vector<1x128xf32> to vector<8x128xf32>
    %19 = arith.divf %15, %18 : vector<8x128xf32>
    %c0_6 = arith.constant 0 : index
    %c0_7 = arith.constant 0 : index
    %20 = vector.load %arg6[%c0_6, %c0_7] : memref<8x128xf32, #tpu.memory_space<vmem>>, vector<8x128xf32>
    tpu.vector_store %arg6[%c0_6, %c0_7], %19 {strides = array<i32>} : memref<8x128xf32, #tpu.memory_space<vmem>>, vector<8x128xf32>,
    %21 = arith.mulf %19, %2 : vector<8x128xf32>
    %cst_8 = arith.constant dense<0.000000e+00> : vector<128xf32>
    %22 = vector.multi_reduction <add>, %21, %cst_8 [0] : vector<8x128xf32> to vector<128xf32>
    %23 = vector.shape_cast %22 : vector<128xf32> to vector<1x128xf32>
    %c0_9 = arith.constant 0 : index
    %c0_10 = arith.constant 0 : index
    %24 = vector.load %arg4[%c0_9, %c0_10] : memref<32x2xf32, #tpu.memory_space<vmem>>, vector<32x1xf32>
    %c0_11 = arith.constant 0 : index
    %c1_12 = arith.constant 1 : index
    %25 = vector.load %arg4[%c0_11, %c1_12] : memref<32x2xf32, #tpu.memory_space<vmem>>, vector<32x1xf32>
    %26 = vector.broadcast %24 : vector<32x1xf32> to vector<32x128xf32>
    %27 = vector.broadcast %23 : vector<1x128xf32> to vector<32x128xf32>
    %28 = arith.mulf %26, %27 : vector<32x128xf32>
    %29 = vector.broadcast %25 : vector<32x1xf32> to vector<32x128xf32>
    %30 = arith.addf %28, %29 : vector<32x128xf32>
    %c0_13 = arith.constant 0 : index
    %c0_14 = arith.constant 0 : index
    %31 = vector.load %arg5[%c0_13, %c0_14] : memref<32x128xf32, #tpu.memory_space<vmem>>, vector<32x128xf32>
    tpu.vector_store %arg5[%c0_13, %c0_14], %30 {strides = array<i32>} : memref<32x128xf32, #tpu.memory_space<vmem>>, vector<32x128xf32>,
    return
  }
  func.func @transform_0(%arg0: i32) -> i32 {
    %c0_i32 = arith.constant 0 : i32
    %c0_i32_0 = arith.constant 0 : i32
    return %c0_i32 : i32
  }
  func.func @transform_1(%arg0: i32) -> (i32, i32) {
    %c0_i32 = arith.constant 0 : i32
    %c0_i32_0 = arith.constant 0 : i32
    return %c0_i32, %arg0 : i32, i32
  }
  func.func @transform_2(%arg0: i32) -> (i32, i32) {
    %c0_i32 = arith.constant 0 : i32
    %c0_i32_0 = arith.constant 0 : i32
    return %c0_i32, %arg0 : i32, i32
  }
  func.func @transform_3(%arg0: i32) -> (i32, i32) {
    %c0_i32 = arith.constant 0 : i32
    %c0_i32_0 = arith.constant 0 : i32
    %c0_i32_1 = arith.constant 0 : i32
    return %c0_i32, %c0_i32_0 : i32, i32
  }
  func.func @transform_4(%arg0: i32) -> (i32, i32) {
    %c0_i32 = arith.constant 0 : i32
    %c0_i32_0 = arith.constant 0 : i32
    return %c0_i32, %arg0 : i32, i32
  }
  func.func @transform_5(%arg0: i32) -> (i32, i32) {
    %c0_i32 = arith.constant 0 : i32
    %c0_i32_0 = arith.constant 0 : i32
    return %c0_i32, %arg0 : i32, i32
  }
}

</mosaic_0001>

<bundles_post_ra>
// kernel: tpu_custom_call.1
= control target key start
LH: loop header
LB: loop body
LE: loop exit
PB: predicated region body
PF: predicated region fallthrough
CT: control target
= control target key end

     0   :  { %11 = vsyncpa [#allocation4], 0  ;;  %s312_s0 = inlined_call_operand.vmem [shape: f32[2], index: 0, kind: input, shape index: {}]   ;;  %s313_s1 = inlined_call_operand.vmem [shape: f32[8,128], index: 1, kind: input, shape index: {}]   ;;  %s314_s2 = inlined_call_operand.vmem [shape: f32[8,128], index: 2, kind: input, shape index: {}]   ;;  %s315_s3 = inlined_call_operand.vmem [shape: f32[32,2], index: 3, kind: input, shape index: {}]   ;;  %s316_s4 = inlined_call_operand.hbm [shape: f32[32,128], index: 4, kind: output, shape index: {0}]   ;;  %s317_s5 = inlined_call_operand.hbm [shape: f32[8,128], index: 5, kind: output, shape index: {1}]  }
   0x1   :  { %12 = vsyncpa [#allocation3], 0 }
   0x2   :  { %13 = vsyncpa [#allocation7], 0  ;;  %s20_s20 = sshll.u32 %s312_s0, 4  ;;  %s21_s20 = int_to_ptr.vmem [resolvable:$true] %s20_s20 }
   0x3   :  { %s168_s21 = scalar_lea.vmem %s21_s20, 16  ;;  %p173_p1 = scmp.lt.s32.totalorder %s21_s20, %s21_s20 }
   0x4   :  { %p169_p0 = scmp.ne.s32.totalorder %s21_s20, %s168_s21  ;;  %p174_p2 = scmp.lt.s32.totalorder %s168_s21, %s168_s21 }
   0x6   :  { %p175_p3 = por %p174_p2, %p173_p1 }
   0x8   :  { %p176_p4 = pnand %p175_p3, %p169_p0 }
   0xa   :  { %179 = shalt.err (!%p176_p4)
}
   0xb   :  { %s230_s22 = smov [#allocation2]  }
   0xc   :  { %23 = dma.vmem_to_smem %s21_s20, 16, %s230_s22, [#allocation4]  }
   0xd   :  { %224 = dma.done.wait [#allocation4], 16  }
   0xe   :  { %225 = vsyncadd [#allocation4], 4294967280 }
   0xf   :  { %33 = sfence }
  0x10   :  { %v71_v0 = vld [vmem:[%s315_s3 + $0x10] sm:$0xff]  ;;  %v69_v1 = vld [vmem:[%s315_s3] sm:$0xff]  ;;  %v231_v2 = vmov 0   ;;  %s34_s0 = sld [smem:[#allocation2]]  ;;  %s152_s27 = sld [smem:[#allocation2 + $0x1]]  ;;  %v72_v3 = vld [vmem:[%s315_s3 + $0x18] sm:$0xff] }
  0x11   :  { %161 = vset.pattern.permute.xlu1 %v231_v2  ;;  %160 = vset.pattern.permute.xlu0 %v231_v2  ;;  %v70_v4 = vld [vmem:[%s315_s3 + $0x8] sm:$0xff]  ;;  %v39_v5 = vld [vmem:[%s314_s2] sm:$0xff]  ;;  %v232_v11 = vmov 1  }
  0x12   :  { %85 = vperm.xlu1 %161, %v71_v0   ;;  %75 = vperm.xlu0 %160, %v69_v1   ;;  %v36_v6 = vld [vmem:[%s313_s1] sm:$0xff]  ;;  %v40_v7 = vmul.f32 5.0, %v39_v5  ;;  %s233_s1 = smov [#allocation6]  }
  0x13   :  { %s139_s2 = sshll.u32 %s233_s1, 4  ;;  %s140_s2 = int_to_ptr.vmem [resolvable:$true] %s139_s2 }
  0x14   :  { %s180_s3 = scalar_lea.vmem %s140_s2, 128  ;;  %p185_p6 = scmp.lt.s32.totalorder %s140_s2, %s140_s2 }
  0x15   :  { %p181_p5 = scmp.ne.s32.totalorder %s140_s2, %s180_s3  ;;  %p186_p7 = scmp.lt.s32.totalorder %s180_s3, %s180_s3 }
  0x16   :  { %90 = vperm.xlu1 %161, %v72_v3   ;;  %80 = vperm.xlu0 %160, %v70_v4   ;;  %v37_v8 = vstv %s34_s0  ;;  %v42_v10 = vstv %s152_s27 }
  0x17   :  { %v38_v9 = vmul.f32 %v37_v8, %v36_v6  ;;  %p187_p8 = por %p186_p7, %p185_p6 }
  0x19   :  { %v41_v12 = vadd.f32 %v40_v7, %v38_v9  ;;  %p188_p9 = pnand %p187_p8, %p181_p5 }
  0x1a   :  { %163 = vset.pattern.permute.xlu1 %v232_v11  ;;  %162 = vset.pattern.permute.xlu0 %v232_v11 }
  0x1b   :  { %102 = vperm.xlu1 %163, %v70_v4   ;;  %98 = vperm.xlu0 %162, %v69_v1   ;;  %v43_v13 = vadd.f32 %v42_v10, %v41_v12 }
  0x1d   :  { %v44_v14 = vrot.slane %v43_v13, 4 }
  0x1f   :  { %106 = vperm.xlu1 %163, %v71_v0   ;;  %110 = vperm.xlu0 %162, %v72_v3   ;;  %v45_v15 = vmax.f32 %v43_v13, %v44_v14 }
  0x21   :  { %v46_v16 = vrot.slane %v45_v15, 2 }
  0x23   :  { %v47_v17 = vmax.f32 %v45_v15, %v46_v16 }
  0x25   :  { %v48_v18 = vrot.slane %v47_v17, 1 }
  0x27   :  { %v49_v19 = vmax.f32 %v47_v17, %v48_v18 }
  0x29   :  { %v50_v20 = vsub.f32 %v43_v13, %v49_v19 }
  0x2b   :  { %v51_v21 = vmul.f32 1.442695, %v50_v20 }
  0x2d   :  { %164 = vpow2.f32 %v51_v21 }
  0x37   :  { %v165_v22 = vpop.eup %164 }
  0x38   :  { %v53_v23 = vrot.slane %v165_v22, 4 }
  0x3a   :  { %v54_v24 = vadd.f32 %v165_v22, %v53_v23 }
  0x3c   :  { %v55_v25 = vrot.slane %v54_v24, 2 }
  0x3e   :  { %v56_v26 = vadd.f32 %v55_v25, %v54_v24 }
  0x40   :  { %v57_v27 = vrot.slane %v56_v26, 1 }
  0x42   :  { %v58_v28 = vadd.f32 %v57_v27, %v56_v26 }
  0x44   :  { %166 = vrcp.f32 %v58_v28 }
  0x4e   :  { %v167_v29 = vpop.eup %166 }
  0x4f   :  { %v60_v30 = vmul.f32 %v167_v29, %v165_v22 }
  0x51   :  { %61 = vst [vmem:[#allocation6] sm:$0xff] %v60_v30 }
  0x52   :  { %191 = shalt.err (!%p188_p9)
}
  0x53   :  { %s192_s13 = scalar_lea.hbm %s317_s5, 128 }
  0x54   :  { %p193_p10 = scmp.ne.s32.totalorder %s317_s5, %s192_s13  ;;  %p196_p11 = scmp.lt.u32.totalorder %s192_s13, %s317_s5 }
  0x56   :  { %p198_p12 = pnand %p196_p11, %p193_p10 }
  0x58   :  { %201 = shalt.err (!%p198_p12)
}
  0x59   :  { %142 = dma.vmem_to_hbm [thread:$0]  %s140_s2, 128, %s317_s5, [#allocation7]   ;;  %v62_v31 = vmul.f32 %v60_v30, %v36_v6 }
  0x5a   :  { %s234_s20 = smov [#allocation5]  }
  0x5b   :  { %v63_v32 = vrot.slane %v62_v31, 4  ;;  %s126_s21 = sshll.u32 %s234_s20, 4  ;;  %s127_s21 = int_to_ptr.vmem [resolvable:$true] %s126_s21 }
  0x5c   :  { %s202_s5 = scalar_lea.vmem %s127_s21, 512  ;;  %p207_p0 = scmp.lt.s32.totalorder %s127_s21, %s127_s21 }
  0x5d   :  { %v64_v33 = vadd.f32 %v63_v32, %v62_v31  ;;  %p203_p13 = scmp.ne.s32.totalorder %s127_s21, %s202_s5  ;;  %p208_p1 = scmp.lt.s32.totalorder %s202_s5, %s202_s5 }
  0x5f   :  { %v65_v34 = vrot.slane %v64_v33, 2  ;;  %p209_p2 = por %p208_p1, %p207_p0 }
  0x61   :  { %v66_v35 = vadd.f32 %v65_v34, %v64_v33  ;;  %p210_p3 = pnand %p209_p2, %p203_p13 }
  0x63   :  { %v67_v37 = vrot.slane %v66_v35, 1 }
  0x65   :  { %v68_v39 = vadd.f32 %v67_v37, %v66_v35 }
  0x91   :  { %v86_v36 = vpop.permute.xlu1 %85  ;;  %v76_v38 = vpop.permute.xlu0 %75 }
  0x92   :  { %v93_v42 = vmul.f32 %v76_v38, %v68_v39  ;;  %v95_v48 = vmul.f32 %v86_v36, %v68_v39 }
  0x95   :  { %v91_v40 = vpop.permute.xlu1 %90  ;;  %v81_v41 = vpop.permute.xlu0 %80 }
  0x96   :  { %v94_v43 = vmul.f32 %v81_v41, %v68_v39  ;;  %v96_v49 = vmul.f32 %v91_v40, %v68_v39 }
  0x9a   :  { %v103_v44 = vpop.permute.xlu1 %102  ;;  %v99_v45 = vpop.permute.xlu0 %98 }
  0x9b   :  { %v114_v46 = vadd.f32 %v103_v44, %v94_v43  ;;  %v113_v47 = vadd.f32 %v99_v45, %v93_v42 }
  0x9d   :  { %118 = vst [vmem:[#allocation5 + $0x8] sm:$0xff] %v114_v46  ;;  %117 = vst [vmem:[#allocation5] sm:$0xff] %v113_v47 }
  0x9e   :  { %v107_v50 = vpop.permute.xlu1 %106  ;;  %v111_v51 = vpop.permute.xlu0 %110 }
  0x9f   :  { %v115_v52 = vadd.f32 %v107_v50, %v95_v48  ;;  %v116_v53 = vadd.f32 %v111_v51, %v96_v49 }
  0xa1   :  { %119 = vst [vmem:[#allocation5 + $0x10] sm:$0xff] %v115_v52  ;;  %120 = vst [vmem:[#allocation5 + $0x18] sm:$0xff] %v116_v53 }
  0xa2   :  { %213 = shalt.err (!%p210_p3)
}
  0xa3   :  { %s214_s24 = scalar_lea.hbm %s316_s4, 512 }
  0xa4   :  { %p215_p4 = scmp.ne.s32.totalorder %s316_s4, %s214_s24  ;;  %p218_p5 = scmp.lt.u32.totalorder %s214_s24, %s316_s4 }
  0xa6   :  { %p220_p6 = pnand %p218_p5, %p215_p4 }
  0xa8   :  { %223 = shalt.err (!%p220_p6)
}
  0xa9   :  { %s235_s28 = smov 128   ;;  %s236_s29 = smov 8  }
  0xaa   :  { %132 = dma.vmem_to_hbm [thread:$0]  %s127_s21, 512, %s316_s4, [#allocation3], %s235_s28, %s235_s28, %s236_s29  }
  0xab   :  { %226 = dma.done.wait [#allocation3], 512  }
  0xac   :  { %227 = vsyncadd [#allocation3], 4294966784 }
  0xad   :  { %228 = dma.done.wait [#allocation7], 128  }
  0xae   :  { %229 = vsyncadd [#allocation7], 4294967168 }
  0xaf   :  { %149 = vsyncpa [#allocation3], 1 }
  0xb0   :  { %150 = vsyncpa [#allocation7], 1 }
  0xb1   :  { %151 = vsyncpa [#allocation4], 1 }

</bundles_post_ra>
